<compile_context>
chip_gen: v6e
topology: v6e:2x2x1
jax: 0.10.0
libtpu: 0.0.40
codegen_flags: <defaults>
</compile_context>

<pallas_src>
import functools

import numpy as np
import jax
import jax.numpy as jnp
from jax import lax
from jax.experimental import pallas as pl
from jax.experimental.pallas import tpu as pltpu

EPS_BN = 1e-5
EPS_ADAIN = 1e-5
VMEM_BUDGET = 24 * 1024 * 1024  # stay well inside v7x's 64 MiB / 32 MiB scoped


# ------------------------------ Pallas kernels ------------------------------

def _upconv_kernel(*refs, n_ops, cout, tanh_out, with_stats):
    """Fused sub-pixel ConvTranspose tile:
         y = [tanh]( sum_i lhs_i @ rhs_i + bias )
       plus (optionally) masked per-channel sum / sumsq partials for BN.

    Ref order: lhs_0..lhs_{n-1}, rhs_0..rhs_{n-1}, bias, [phase_valid],
               y_out, [psum_out, psq_out]."""
    n_in = 2 * n_ops + 1 + (1 if with_stats else 0)
    lhs_refs = refs[:n_ops]
    rhs_refs = refs[n_ops:2 * n_ops]
    bias_ref = refs[2 * n_ops]
    y_ref = refs[n_in]

    acc = jnp.dot(lhs_refs[0][...], rhs_refs[0][...],
                  preferred_element_type=jnp.float32)
    for t in range(1, n_ops):
        acc = acc + jnp.dot(lhs_refs[t][...], rhs_refs[t][...],
                            preferred_element_type=jnp.float32)
    y = acc + bias_ref[...]
    if tanh_out:
        y = jnp.tanh(y)
    y_ref[...] = y

    if with_stats:
        rv_ref = refs[2 * n_ops + 1]          # (tm, 4) phase validity {0,1}
        psum_ref = refs[n_in + 1]             # (1, 8, 4*cout) partial sums
        psq_ref = refs[n_in + 2]
        tm, ct = y.shape
        # Expand the per-row, per-phase validity to the phase-major lane
        # layout of y (lane = phase*cout + co) with broadcasts only.
        mask = jnp.concatenate(
            [jnp.broadcast_to(rv_ref[:, ph:ph + 1], (tm, cout))
             for ph in range(4)], axis=1)
        ym = y * mask
        s = jnp.sum(ym, axis=0, keepdims=True)
        sq = jnp.sum(ym * ym, axis=0, keepdims=True)
        row8 = lax.broadcasted_iota(jnp.int32, (8, ct), 0)
        psum_ref[0] = jnp.where(row8 == 0, s, 0.0)
        psq_ref[0] = jnp.where(row8 == 0, sq, 0.0)


def _adain_kernel(c_ref, s_ref, o_ref, *, hw):
    """AdaIN for one batch element; blocks are (1, HW, C), channels-last."""
    c = c_ref[0]
    s = s_ref[0]
    cm = jnp.mean(c, axis=0, keepdims=True)
    cv = jnp.sum((c - cm) ** 2, axis=0, keepdims=True) / (hw - 1)  # unbiased
    sm = jnp.mean(s, axis=0, keepdims=True)
    sv = jnp.sum((s - sm) ** 2, axis=0, keepdims=True) / (hw - 1)
    o_ref[0] = (c - cm) / jnp.sqrt(cv + EPS_ADAIN) * jnp.sqrt(sv + EPS_ADAIN) + sm


# ------------------------------ helpers (XLA glue) ---------------------------

def _round_up(x, m):
    return ((x + m - 1) // m) * m


def _choose_tm(m, ks, ct):
    """Biggest row tile (multiple of 8) within the VMEM budget, capped at
    1024 (2048 for small-K layers, per review)."""
    m8 = _round_up(m, 8)
    tm_cap = 2048 if sum(ks) <= 256 else 1024
    tm = min(tm_cap, m8)
    tm = _round_up(tm, 8)

    def est(t):  # double-buffered lhs + output blocks + resident rhs/bias (f32)
        return 4 * (2 * t * (sum(ks) + ct) + sum(k * ct for k in ks) + ct)

    while tm > 8 and est(tm) > VMEM_BUDGET:
        tm = _round_up(max(8, tm // 2), 8)
    return max(8, min(tm, m8))


def _gather_taps(x):
    """x: (N, H, W, C) -> (N*(H+1)*(W+1), 4*C) 2x2-neighborhood taps of the
    1-padded input (the sub-pixel ConvTranspose LHS).  Elementwise producers
    (BN affine, ReLU) fuse into this gather in XLA."""
    n, h, w, c = x.shape
    xp = jnp.pad(x, ((0, 0), (1, 1), (1, 1), (0, 0)))
    taps = [xp[:, dy:dy + h + 1, dx:dx + w + 1, :]
            for dy in range(2) for dx in range(2)]
    lhs = jnp.concatenate(taps, axis=-1)
    return lhs.reshape(n * (h + 1) * (w + 1), 4 * c)


def _make_subpixel_rhs(w):
    """w: (Cin, Cout, 4, 4) ConvTranspose2d weight -> (4*Cin, 4*Cout) matrix.
    K layout = (dy, dx, ci) taps; lane layout = (ry, rx, co) output phases.
    Tap (dy,dx) contributes to phase (ry,rx) through kernel element
    (ky, kx) = (ry + 2 - 2*dy, rx + 2 - 2*dx)."""
    blocks = []
    for dy in range(2):
        for dx in range(2):
            cols = []
            for ry in range(2):
                for rx in range(2):
                    cols.append(w[:, :, ry + 2 - 2 * dy, rx + 2 - 2 * dx])
            blocks.append(jnp.concatenate(cols, axis=1))   # (Cin, 4*Cout)
    return jnp.concatenate(blocks, axis=0)                  # (4*Cin, 4*Cout)


def _phase_valid_mask(n, h, w, m_pad):
    """(m_pad, 4) float32: for slab row (n, p, q) and phase (ry, rx) whether
    the produced pixel lies inside the valid 2H x 2W output window."""
    p = jnp.arange(h + 1)
    q = jnp.arange(w + 1)
    vy = jnp.stack([p > 0, p < h], axis=1).astype(jnp.float32)   # (h+1, ry)
    vx = jnp.stack([q > 0, q < w], axis=1).astype(jnp.float32)   # (w+1, rx)
    v = vy[:, None, :, None] * vx[None, :, None, :]              # (h+1,w+1,2,2)
    v = jnp.broadcast_to(v[None], (n, h + 1, w + 1, 2, 2)).reshape(-1, 4)
    if m_pad > v.shape[0]:
        v = jnp.pad(v, ((0, m_pad - v.shape[0]), (0, 0)))
    return v


def _depth_to_space_crop(y, n, h, w, cout):
    """(N*(H+1)*(W+1), 4*Cout) phase-stacked slab -> (N, 2H, 2W, Cout)."""
    y = y.reshape(n, h + 1, w + 1, 2, 2, cout)
    y = y.transpose(0, 1, 3, 2, 4, 5).reshape(n, 2 * (h + 1), 2 * (w + 1), cout)
    return y[:, 1:2 * h + 1, 1:2 * w + 1, :]


# ------------------------------ kernel wrapper -------------------------------

def subpixel_matmul(lhs_list, rhs_list, bias, *, n, h, w, cout,
                    with_stats, tanh_out):
    ks = [l.shape[1] for l in lhs_list]
    n_ops = len(lhs_list)
    ct = 4 * cout
    m_true = n * (h + 1) * (w + 1)
    tm = _choose_tm(m_true, ks, ct)
    m_pad = _round_up(m_true, tm)
    if m_pad != m_true:
        lhs_list = [jnp.pad(l, ((0, m_pad - m_true), (0, 0))) for l in lhs_list]
    n_tiles = m_pad // tm

    bias_lane = jnp.tile(bias, 4).reshape(1, ct)   # broadcast bias over phases

    inputs = list(lhs_list) + list(rhs_list) + [bias_lane]
    in_specs = ([pl.BlockSpec((tm, k), lambda i: (i, 0)) for k in ks]
                + [pl.BlockSpec((k, ct), lambda i: (0, 0)) for k in ks]
                + [pl.BlockSpec((1, ct), lambda i: (0, 0))])
    if with_stats:
        inputs.append(_phase_valid_mask(n, h, w, m_pad))
        in_specs.append(pl.BlockSpec((tm, 4), lambda i: (i, 0)))
        out_shape = (jax.ShapeDtypeStruct((m_pad, ct), jnp.float32),
                     jax.ShapeDtypeStruct((n_tiles, 8, ct), jnp.float32),
                     jax.ShapeDtypeStruct((n_tiles, 8, ct), jnp.float32))
        out_specs = (pl.BlockSpec((tm, ct), lambda i: (i, 0)),
                     pl.BlockSpec((1, 8, ct), lambda i: (i, 0, 0)),
                     pl.BlockSpec((1, 8, ct), lambda i: (i, 0, 0)))
    else:
        out_shape = jax.ShapeDtypeStruct((m_pad, ct), jnp.float32)
        out_specs = pl.BlockSpec((tm, ct), lambda i: (i, 0))

    res = pl.pallas_call(
        functools.partial(_upconv_kernel, n_ops=n_ops, cout=cout,
                          tanh_out=tanh_out, with_stats=with_stats),
        out_shape=out_shape,
        grid=(n_tiles,),
        in_specs=in_specs,
        out_specs=out_specs,
        compiler_params=pltpu.CompilerParams(
            dimension_semantics=("parallel",)),
    )(*inputs)

    if with_stats:
        y_pad, psum, psq = res
        sum_c = psum.sum(axis=(0, 1)).reshape(4, cout).sum(axis=0)
        sq_c = psq.sum(axis=(0, 1)).reshape(4, cout).sum(axis=0)
        return y_pad[:m_true], (sum_c, sq_c)
    return res[:m_true], None


def adain(content, style):
    """AdaIN on channels-last activations: content (N,H,W,C), style (N,H,W,C)."""
    n, h, w, c = content.shape
    hw = h * w
    out = pl.pallas_call(
        functools.partial(_adain_kernel, hw=hw),
        out_shape=jax.ShapeDtypeStruct((n, hw, c), jnp.float32),
        grid=(n,),
        in_specs=[pl.BlockSpec((1, hw, c), lambda i: (i, 0, 0)),
                  pl.BlockSpec((1, hw, c), lambda i: (i, 0, 0))],
        out_specs=pl.BlockSpec((1, hw, c), lambda i: (i, 0, 0)),
        compiler_params=pltpu.CompilerParams(dimension_semantics=("parallel",)),
    )(content.reshape(n, hw, c), style.reshape(n, hw, c))
    return out.reshape(n, h, w, c)


# ------------------------------- UpConv block --------------------------------

def upconv_layer(parts, w, b, gamma, beta, *, apply_relu=True,
                 batch_norm=True, final_tanh=False):
    """ReLU -> ConvTranspose2d(4,2,1) -> [BatchNorm2d] [-> Tanh], NHWC in/out.

    `parts` is the (virtual) channel-concat of the layer input; each part is
    tap-gathered / matmul'ed separately so the concat never hits HBM."""
    n, h, wd, _ = parts[0].shape
    cout = w.shape[1]
    cins = [p.shape[-1] for p in parts]
    assert sum(cins) == w.shape[0]
    offs = np.cumsum([0] + cins)
    rhs_list = [_make_subpixel_rhs(w[int(offs[i]):int(offs[i + 1])])
                for i in range(len(parts))]
    acts = [jax.nn.relu(p) if apply_relu else p for p in parts]
    lhs_list = [_gather_taps(a) for a in acts]

    y_slab, stats = subpixel_matmul(
        lhs_list, rhs_list, b, n=n, h=h, w=wd, cout=cout,
        with_stats=batch_norm, tanh_out=final_tanh)
    y = _depth_to_space_crop(y_slab, n, h, wd, cout)

    if batch_norm:
        sum_c, sq_c = stats
        cnt = float(n * (2 * h) * (2 * wd))
        mean = sum_c / cnt
        var = jnp.maximum(sq_c / cnt - mean * mean, 0.0)   # clamp cancellation
        scale = gamma * lax.rsqrt(var + EPS_BN)
        shift = beta - mean * scale
        y = y * scale + shift   # fuses into the next layer's tap-gather (XLA)
    return y


# --------------------------------- Decoder -----------------------------------

def decoder_forward(xs, params, adain_layer_idx=5):
    # NCHW -> NHWC once at the boundary; everything internal is channels-last.
    xs = [jnp.transpose(x, (0, 2, 3, 1)) for x in xs]
    x1, x2, x3, x4, x5, x6, x7, x8 = xs
    skips = [x7, x6, x5, x4, x3, x2, x1]

    x_out = upconv_layer([x8], *params[0])          # up1 (dropout: identity)
    for i in range(7):
        curr_idx = i + 1
        skip = skips[i]
        if curr_idx == adain_layer_idx:
            skip = adain(skip, x_out)
        is_last = (i == 6)
        x_out = upconv_layer([x_out, skip], *params[i + 1],
                             batch_norm=not is_last, final_tanh=is_last)
    return jnp.transpose(x_out, (0, 3, 1, 2))       # NHWC -> NCHW


# ------------------------- numpy reference (sanity) ---------------------------

def _np_conv_transpose(x, w, b):
    n, cin, h, wd = x.shape
    cout = w.shape[1]
    out = np.zeros((n, cout, 2 * h, 2 * wd), np.float32)
    for ni in range(n):
        for ci in range(cin):
            for iy in range(h):
                for ix in range(wd):
                    v = x[ni, ci, iy, ix]
                    for ky in range(4):
                        for kx in range(4):
                            oy, ox = iy * 2 - 1 + ky, ix * 2 - 1 + kx
                            if 0 <= oy < 2 * h and 0 <= ox < 2 * wd:
                                out[ni, :, oy, ox] += v * w[ci, :, ky, kx]
    return out + b[None, :, None, None]


# ----------------------------------- main -------------------------------------

if __name__ == "__main__":
    nf, out_nc, batch = 4, 2, 2

    ins = [8 * nf, 16 * nf, 16 * nf, 16 * nf, 16 * nf, 8 * nf, 4 * nf, 2 * nf]
    outs = [8 * nf, 8 * nf, 8 * nf, 8 * nf, 4 * nf, 2 * nf, nf, out_nc]

    key = jax.random.PRNGKey(0)
    params = []
    for cin, cout in zip(ins, outs):
        key, kw, kb = jax.random.split(key, 3)
        w = jax.random.normal(kw, (cin, cout, 4, 4), jnp.float32) * 0.02
        b = jax.random.normal(kb, (cout,), jnp.float32) * 0.02
        gamma = jnp.ones((cout,), jnp.float32)
        beta = jnp.zeros((cout,), jnp.float32)
        params.append((w, b, gamma, beta))

    feat_shapes = [
        (batch, nf, 128, 128),       # x1
        (batch, 2 * nf, 64, 64),     # x2
        (batch, 4 * nf, 32, 32),     # x3
        (batch, 8 * nf, 16, 16),     # x4
        (batch, 8 * nf, 8, 8),       # x5
        (batch, 8 * nf, 4, 4),       # x6
        (batch, 8 * nf, 2, 2),       # x7
        (batch, 8 * nf, 1, 1),       # x8
    ]
    key, *ks = jax.random.split(key, 9)
    xs = tuple(jax.random.normal(k, s, jnp.float32) for k, s in zip(ks, feat_shapes))

    # --- sanity check: sub-pixel Pallas ConvTranspose vs. direct numpy ref ---
    kx_key, kw_key, kb_key = jax.random.split(jax.random.PRNGKey(7), 3)
    xt = jax.random.normal(kx_key, (1, 3, 3, 3), jnp.float32)
    wt = jax.random.normal(kw_key, (3, 2, 4, 4), jnp.float32) * 0.1
    bt = jax.random.normal(kb_key, (2,), jnp.float32) * 0.1
    got = upconv_layer([jnp.transpose(xt, (0, 2, 3, 1))], wt, bt,
                       jnp.ones((2,)), jnp.zeros((2,)),
                       apply_relu=False, batch_norm=False, final_tanh=False)
    got = jnp.transpose(got, (0, 3, 1, 2))
    ref = _np_conv_transpose(np.asarray(xt), np.asarray(wt), np.asarray(bt))
    assert np.allclose(np.asarray(got), ref, atol=1e-4, rtol=1e-4), "convT mismatch"

    # --- run the full decoder ---
    out = jax.jit(decoder_forward, static_argnums=(2,))(xs, params, 5)
    out = jax.block_until_ready(out)

    assert out.shape == (batch, out_nc, 256, 256), out.shape
    assert bool(jnp.all(jnp.isfinite(out)))
    assert bool(jnp.all(jnp.abs(out) <= 1.0))   # tanh output range

    print("KERNEL_OK")
</pallas_src>

<mosaic_0001>
module attributes {stable_mosaic.version = 11 : i64} {
  func.func @_upconv_kernel(%arg0: i32, %arg1: memref<16x12xf32, #tpu.memory_space<vmem>>, %arg2: memref<12x8xf32, #tpu.memory_space<vmem>>, %arg3: memref<1x8xf32, #tpu.memory_space<vmem>>, %arg4: memref<16x8xf32, #tpu.memory_space<vmem>>) attributes {dimension_semantics = [#tpu.dimension_semantics<parallel>], iteration_bounds = array<i64: 1>, scalar_prefetch = 0 : i64, scratch_operands = 0 : i64, tpu.core_type = #tpu.core_type<tc>, window_params = [{transform_indices = @transform_0, window_bounds = array<i64: 16, 12>}, {pipeline_mode = #tpu.pipeline_mode<synchronous>, transform_indices = @transform_1, window_bounds = array<i64: 12, 8>}, {pipeline_mode = #tpu.pipeline_mode<synchronous>, transform_indices = @transform_2, window_bounds = array<i64: 1, 8>}, {transform_indices = @transform_3, window_bounds = array<i64: 16, 8>}]} {
    %c0 = arith.constant 0 : index
    %c0_0 = arith.constant 0 : index
    %0 = vector.load %arg1[%c0, %c0_0] : memref<16x12xf32, #tpu.memory_space<vmem>>, vector<16x12xf32>
    %c0_1 = arith.constant 0 : index
    %c0_2 = arith.constant 0 : index
    %1 = vector.load %arg2[%c0_1, %c0_2] : memref<12x8xf32, #tpu.memory_space<vmem>>, vector<12x8xf32>
    %cst = arith.constant dense<0.000000e+00> : vector<16x8xf32>
    %2 = tpu.matmul %0, %1, %cst {dimension_numbers = #tpu.dot_dimension_numbers<[1], [0], [0], [1], [0, 0, 1, 1], [], []>} : vector<16x12xf32>, vector<12x8xf32>, vector<16x8xf32> -> vector<16x8xf32>
    %c0_3 = arith.constant 0 : index
    %c0_4 = arith.constant 0 : index
    %3 = vector.load %arg3[%c0_3, %c0_4] : memref<1x8xf32, #tpu.memory_space<vmem>>, vector<1x8xf32>
    %4 = vector.broadcast %3 : vector<1x8xf32> to vector<16x8xf32>
    %5 = arith.addf %2, %4 : vector<16x8xf32>
    %c0_5 = arith.constant 0 : index
    %c0_6 = arith.constant 0 : index
    %6 = vector.load %arg4[%c0_5, %c0_6] : memref<16x8xf32, #tpu.memory_space<vmem>>, vector<16x8xf32>
    tpu.vector_store %arg4[%c0_5, %c0_6], %5 {strides = array<i32>} : memref<16x8xf32, #tpu.memory_space<vmem>>, vector<16x8xf32>,
    return
  }
  func.func @transform_0(%arg0: i32) -> (i32, i32) {
    %c0_i32 = arith.constant 0 : i32
    %c0_i32_0 = arith.constant 0 : i32
    return %arg0, %c0_i32 : i32, i32
  }
  func.func @transform_1(%arg0: i32) -> (i32, i32) {
    %c0_i32 = arith.constant 0 : i32
    %c0_i32_0 = arith.constant 0 : i32
    %c0_i32_1 = arith.constant 0 : i32
    return %c0_i32, %c0_i32_0 : i32, i32
  }
  func.func @transform_2(%arg0: i32) -> (i32, i32) {
    %c0_i32 = arith.constant 0 : i32
    %c0_i32_0 = arith.constant 0 : i32
    %c0_i32_1 = arith.constant 0 : i32
    return %c0_i32, %c0_i32_0 : i32, i32
  }
  func.func @transform_3(%arg0: i32) -> (i32, i32) {
    %c0_i32 = arith.constant 0 : i32
    %c0_i32_0 = arith.constant 0 : i32
    return %arg0, %c0_i32 : i32, i32
  }
}

</mosaic_0001>

<bundles_post_ra>
// kernel: tpu_custom_call.1
= control target key start
LH: loop header
LB: loop body
LE: loop exit
PB: predicated region body
PF: predicated region fallthrough
CT: control target
= control target key end

     0   :  { %vm32_vm0 = vcmask 1043456   ;;  %vm25_vm1 = vcmask 97280   ;;  %vm111_vm2 = vcmask 64512   ;;  %s174_s1 = inlined_call_operand.vmem [shape: f32[12,8], index: 1, kind: input, shape index: {}]   ;;  %s175_s0 = inlined_call_operand.vmem [shape: f32[16,12], index: 0, kind: input, shape index: {}]   ;;  %s176_s2 = inlined_call_operand.vmem [shape: f32[1,8], index: 2, kind: input, shape index: {}]   ;;  %s177_s3 = inlined_call_operand.vmem [shape: f32[16,8], index: 3, kind: output, shape index: {}]  }
   0x1   :  { %v17_v0 = vld [vmem:[%s174_s1 + $0x8] sm:$0xf]  ;;  %v16_v1 = vld [vmem:[%s174_s1] sm:$0xff] }
   0x2   :  { %v14_v2 = vld [vmem:[%s175_s0] sm:$0xff]  ;;  %126 = vmatprep.subr.msk.mxu0 %vm32_vm0, %v17_v0  ;;  %v15_v3 = vld [vmem:[%s175_s0 + $0x8] sm:$0xff] }
   0x3   :  { %130 = vmatprep.mubr.msk.f32.mxu0 %vm25_vm1, %v14_v2  ;;  %127 = vmatpush3.msk.msra.mxu0 %vm32_vm0, %v17_v0  ;;  %v118_v4 = vld [vmem:[%s176_s2] ss:$0 sm:$0xff] }
   0x4   :  { %128 = vmatprep.subr.mxu0 %v16_v1 }
   0x5   :  { %129 = vmatpush3.msra.mxu0 %v16_v1 }
   0x6   :  { %131 = vmatmul.mubr.msk.f32.vlgmr.msra.gmra.mxu0 %vm25_vm1, %v15_v3 }
  0xc6   :  { %v132_v5 = vpop.f32.mrf.mxu0 }
  0xc7   :  { %v108_v6 = vadd.f32 %v132_v5, %v118_v4 }
  0xc8   :  { %v102_v7 = vpop.f32.mrf.mxu0 }
  0xc9   :  { %113 = vst.msk [vmem:[%s177_s3 + $0x8] sm:$0xff] %vm111_vm2, %v108_v6  ;;  %v103_v8 = vadd.f32 %v118_v4, %v102_v7 }
  0xcb   :  { %112 = vst.msk [vmem:[%s177_s3] sm:$0xff] %vm111_vm2, %v103_v8 }

</bundles_post_ra>
